<compile_context>
chip_gen: v5e
topology: v5e:2x2
jax: 0.10.0
libtpu: 0.0.40
codegen_flags: <defaults>
</compile_context>

<pallas_src>
import functools
import math

import jax
import jax.numpy as jnp
import numpy as np
from jax.experimental import pallas as pl
from jax.experimental.pallas import tpu as pltpu


# -----------------------------------------------------------------------------
# Per-generation knobs.
# -----------------------------------------------------------------------------
def _device_kind():
    try:
        return jax.devices()[0].device_kind.lower()
    except Exception:  # pragma: no cover
        return ""


def _vmem_limit_bytes():
    # v7x has only 64 MiB physical VMEM per TC -> leave headroom for compiler
    # internal scratch; v5e/v6e have 128 MiB so 64 MiB scoped is comfortable.
    return (40 if "v7" in _device_kind() else 64) * 1024 * 1024


def _exp_dtype(compute_dtype):
    # bf16 EUP exists on v6e/v7x (softmax exp is the saturating slot there);
    # keep the exp in f32 on v5e and older (no bf16 EUP).
    if jnp.dtype(compute_dtype) != jnp.dtype(jnp.bfloat16):
        return jnp.float32
    kind = _device_kind()
    if any(v in kind for v in ("v2", "v3", "v4", "v5")):
        return jnp.float32
    return jnp.bfloat16


# -----------------------------------------------------------------------------
# Kernel 1: fused Q/K/V projections   y = x @ W + b   on (TS, D) tiles.
# -----------------------------------------------------------------------------
def qkv_proj_kernel(xq_ref, xk_ref, xv_ref,
                    wq_ref, bq_ref, wk_ref, bk_ref, wv_ref, bv_ref,
                    q_ref, k_ref, v_ref):
    def proj(x_ref, w_ref, b_ref, out_ref):
        y = jnp.dot(x_ref[0], w_ref[...], preferred_element_type=jnp.float32)
        y = y + b_ref[...]                                  # bias added once per tile
        out_ref[0] = y.astype(out_ref.dtype)

    proj(xq_ref, wq_ref, bq_ref, q_ref)
    proj(xk_ref, wk_ref, bk_ref, k_ref)
    proj(xv_ref, wv_ref, bv_ref, v_ref)


# -----------------------------------------------------------------------------
# Kernel 2: flash attention (online softmax over KV blocks).
#   q_ref: (1, H, TQ, d_k)  kT_ref: (1, H, d_k, TK)  v_ref: (1, H, TK, d_k)
#   ctx_ref: (1, H, TQ, d_k)
#   scratch: m, l -> (H, TQ, 1) f32 ; acc -> (H, TQ, d_k) f32
#   Note: q arrives pre-scaled by 1/sqrt(d_k) (folded into wq/bq), so no per-step
#   (H,TQ,TK) scale multiply.
# -----------------------------------------------------------------------------
def flash_attn_kernel(q_ref, kT_ref, v_ref, ctx_ref,
                      m_sc, l_sc, acc_sc, *, exp_dtype):
    kv_idx = pl.program_id(2)

    @pl.when(kv_idx == 0)
    def _init():
        m_sc[...] = jnp.full_like(m_sc, -jnp.inf)
        l_sc[...] = jnp.zeros_like(l_sc)
        acc_sc[...] = jnp.zeros_like(acc_sc)

    q = q_ref[0]                                            # (H, TQ, d_k)
    kT = kT_ref[0]                                          # (H, d_k, TK) pre-transposed
    v = v_ref[0]                                            # (H, TK, d_k)

    # Head-batched scores: natively shaped MXU operands (no implicit K transpose).
    s = jnp.einsum("hqd,hdk->hqk", q, kT, preferred_element_type=jnp.float32)

    m_prev = m_sc[...]                                      # (H, TQ, 1)
    m_new = jnp.maximum(m_prev, jnp.max(s, axis=-1, keepdims=True))
    alpha = jnp.exp(m_prev - m_new)                         # f32 rescale factor
    p = jnp.exp((s - m_new).astype(exp_dtype))              # bf16 exp on v6e/v7x, f32 on v5e
    l_sc[...] = alpha * l_sc[...] + jnp.sum(p, axis=-1, keepdims=True,
                                            dtype=jnp.float32)
    acc_sc[...] = alpha * acc_sc[...] + jnp.einsum(
        "hqk,hkd->hqd", p.astype(v.dtype), v,               # bf16 operands -> MXU, f32 acc
        preferred_element_type=jnp.float32)
    m_sc[...] = m_new

    @pl.when(kv_idx == pl.num_programs(2) - 1)
    def _finalize():
        # EUP approximate reciprocal + one Newton step (EUP slot is idle here).
        l = l_sc[...]
        inv_l = pl.reciprocal(l, approx=True)
        inv_l = inv_l * (2.0 - l * inv_l)
        ctx_ref[0] = (acc_sc[...] * inv_l).astype(ctx_ref.dtype)


# -----------------------------------------------------------------------------
# Kernel 3: output projection on head-merged, lane-dense (TS, D) context.
#   Full K = D contraction (vs. H skinny K = d_k matmuls in the old epilogue).
# -----------------------------------------------------------------------------
def out_proj_kernel(x_ref, w_ref, b_ref, o_ref):
    y = jnp.dot(x_ref[0], w_ref[...], preferred_element_type=jnp.float32)
    o_ref[0] = (y + b_ref[...]).astype(o_ref.dtype)


def _seq_block(seq_len, target):
    """Largest block: `target` if it divides S, else the full sequence."""
    # TODO(synk): ragged sequence lengths (S not divisible by the 128-multiple
    # targets) fall back to a single full-S block; a masked trailing block would
    # be needed to keep long odd-length sequences inside the VMEM budget.
    return target if seq_len % target == 0 else seq_len


def prepare_params(params, *, num_heads, compute_dtype=jnp.bfloat16):
    """One-time weight transform: fold 1/sqrt(d_k) into wq/bq and cast to bf16."""
    d_model = params["wq"].shape[0]
    assert d_model % num_heads == 0
    scale = 1.0 / math.sqrt(d_model // num_heads)
    prepped = dict(params)
    prepped["wq"] = params["wq"] * scale
    prepped["bq"] = params["bq"] * scale
    return {k: jnp.asarray(v, compute_dtype) for k, v in prepped.items()}


def multi_head_attention(query, key, value, prepared_params, *, num_heads,
                         block_q=256, block_kv=512, block_proj=512):
    """query/key/value: [B, S, D]. prepared_params: output of prepare_params()."""
    B, S, D = query.shape
    assert D % num_heads == 0
    d_k = D // num_heads
    out_dtype = query.dtype
    compute_dtype = prepared_params["wq"].dtype
    isz = jnp.dtype(compute_dtype).itemsize
    exp_dtype = _exp_dtype(compute_dtype)

    ts = _seq_block(S, block_proj)
    tq = _seq_block(S, block_q)
    tk = _seq_block(S, block_kv)

    vmem_limit = _vmem_limit_bytes()
    cparams_2d = pltpu.CompilerParams(
        dimension_semantics=("parallel", "parallel"),
        vmem_limit_bytes=vmem_limit)
    cparams_attn = pltpu.CompilerParams(
        # batch & q-block axes parallel (megacore on v7x); KV reduction axis last
        # and arbitrary. For best v7x balance B*(S/tq) should be >= 2 and even.
        dimension_semantics=("parallel", "parallel", "arbitrary"),
        vmem_limit_bytes=vmem_limit)

    # bf16 activations feed the MXU and halve HBM/VMEM traffic.
    query = query.astype(compute_dtype)
    key = key.astype(compute_dtype)
    value = value.astype(compute_dtype)

    # ---- 1) fused Q/K/V projections -----------------------------------------
    x_spec = pl.BlockSpec((1, ts, D), lambda b, s: (b, s, 0))
    # Constant-index weight/bias blocks: single-buffered (saves VMEM, esp. v7x).
    w_spec = pl.BlockSpec((D, D), lambda b, s: (0, 0), pipeline_mode=pl.Buffered(1))
    b_spec = pl.BlockSpec((1, D), lambda b, s: (0, 0), pipeline_mode=pl.Buffered(1))

    proj_cost = pl.CostEstimate(
        flops=6 * B * S * D * D,
        transcendentals=0,
        bytes_accessed=(6 * B * S * D + 3 * (D * D + D)) * isz)

    q, k, v = pl.pallas_call(
        qkv_proj_kernel,
        out_shape=tuple(jax.ShapeDtypeStruct((B, S, D), compute_dtype)
                        for _ in range(3)),
        grid_spec=pltpu.PrefetchScalarGridSpec(
            num_scalar_prefetch=0,
            grid=(B, S // ts),
            in_specs=[x_spec, x_spec, x_spec,
                      w_spec, b_spec, w_spec, b_spec, w_spec, b_spec],
            out_specs=[x_spec, x_spec, x_spec],
        ),
        compiler_params=cparams_2d,
        cost_estimate=proj_cost,
    )(query, key, value,
      prepared_params["wq"], prepared_params["bq"],
      prepared_params["wk"], prepared_params["bk"],
      prepared_params["wv"], prepared_params["bv"])

    # ---- 2) head split (wrapper-side layout plumbing; K pre-transposed) -------
    def split_heads(x):                               # [B,S,D] -> [B,H,S,d_k]
        return x.reshape(B, S, num_heads, d_k).transpose(0, 2, 1, 3)

    q4 = split_heads(q)
    v4 = split_heads(v)
    kT4 = k.reshape(B, S, num_heads, d_k).transpose(0, 2, 3, 1)   # [B,H,d_k,S]

    # ---- 3) flash attention ----------------------------------------------------
    q_spec = pl.BlockSpec((1, num_heads, tq, d_k), lambda b, qi, ki: (b, 0, qi, 0))
    kT_spec = pl.BlockSpec((1, num_heads, d_k, tk), lambda b, qi, ki: (b, 0, 0, ki))
    v_spec = pl.BlockSpec((1, num_heads, tk, d_k), lambda b, qi, ki: (b, 0, ki, 0))
    ctx_spec = pl.BlockSpec((1, num_heads, tq, d_k), lambda b, qi, ki: (b, 0, qi, 0))

    attn_cost = pl.CostEstimate(
        flops=4 * B * num_heads * S * S * d_k,
        transcendentals=B * num_heads * S * S,
        bytes_accessed=4 * B * S * D * isz)

    ctx4 = pl.pallas_call(
        functools.partial(flash_attn_kernel, exp_dtype=exp_dtype),
        out_shape=jax.ShapeDtypeStruct((B, num_heads, S, d_k), compute_dtype),
        grid_spec=pltpu.PrefetchScalarGridSpec(
            num_scalar_prefetch=0,
            grid=(B, S // tq, S // tk),
            in_specs=[q_spec, kT_spec, v_spec],
            out_specs=ctx_spec,
            scratch_shapes=[pltpu.VMEM((num_heads, tq, 1), jnp.float32),
                            pltpu.VMEM((num_heads, tq, 1), jnp.float32),
                            pltpu.VMEM((num_heads, tq, d_k), jnp.float32)],
        ),
        compiler_params=cparams_attn,
        cost_estimate=attn_cost,
    )(q4, kT4, v4)

    # ---- 4) head merge (XLA layout plumbing) + lane-dense output projection ---
    ctx = ctx4.transpose(0, 2, 1, 3).reshape(B, S, D)

    oproj_cost = pl.CostEstimate(
        flops=2 * B * S * D * D,
        transcendentals=0,
        bytes_accessed=(2 * B * S * D + D * D + D) * isz)

    out = pl.pallas_call(
        out_proj_kernel,
        out_shape=jax.ShapeDtypeStruct((B, S, D), out_dtype),
        grid_spec=pltpu.PrefetchScalarGridSpec(
            num_scalar_prefetch=0,
            grid=(B, S // ts),
            in_specs=[x_spec, w_spec, b_spec],
            out_specs=x_spec,
        ),
        compiler_params=cparams_2d,
        cost_estimate=oproj_cost,
    )(ctx, prepared_params["wo"], prepared_params["bo"])

    return out


def reference_mha(query, key, value, params, *, num_heads):
    """Pure-JAX f32 reference mirroring the PyTorch forward (eval mode, mask=None)."""
    B, S, D = query.shape
    d_k = D // num_heads

    def lin(x, w, b):
        return jnp.dot(x, w) + b

    def split_heads(x):                               # [B,S,D] -> [B,h,S,d_k]
        return x.reshape(B, S, num_heads, d_k).transpose(0, 2, 1, 3)

    q = split_heads(lin(query, params["wq"], params["bq"]))
    k = split_heads(lin(key,   params["wk"], params["bk"]))
    v = split_heads(lin(value, params["wv"], params["bv"]))

    scores = jnp.einsum("bhqd,bhkd->bhqk", q, k) / math.sqrt(d_k)
    p = jax.nn.softmax(scores, axis=-1)
    x = jnp.einsum("bhqk,bhkd->bhqd", p, v)
    x = x.transpose(0, 2, 1, 3).reshape(B, S, D)
    return lin(x, params["wo"], params["bo"])


if __name__ == "__main__":
    B, S, D, H = 2, 8, 32, 4   # batch, seq, d_model, heads (d_k = 8)

    key0 = jax.random.PRNGKey(0)
    keys = jax.random.split(key0, 12)

    def init_linear(kw, kb, fan_in, fan_out):
        bound = 1.0 / math.sqrt(fan_in)
        w = jax.random.uniform(kw, (fan_in, fan_out), jnp.float32, -bound, bound)
        b = jax.random.uniform(kb, (1, fan_out), jnp.float32, -bound, bound)
        return w, b

    wq, bq = init_linear(keys[0], keys[1], D, D)
    wk, bk = init_linear(keys[2], keys[3], D, D)
    wv, bv = init_linear(keys[4], keys[5], D, D)
    wo, bo = init_linear(keys[6], keys[7], D, D)
    params = dict(wq=wq, bq=bq, wk=wk, bk=bk, wv=wv, bv=bv, wo=wo, bo=bo)

    query = jax.random.normal(keys[8], (B, S, D), jnp.float32)
    key_in = jax.random.normal(keys[9], (B, S, D), jnp.float32)
    value = jax.random.normal(keys[10], (B, S, D), jnp.float32)

    prepared = prepare_params(params, num_heads=H, compute_dtype=jnp.bfloat16)

    out = multi_head_attention(query, key_in, value, prepared, num_heads=H)
    out = jax.block_until_ready(out)

    ref = reference_mha(query, key_in, value, params, num_heads=H)
    # Tolerance covers the bf16 activation/weight/softmax-probability rounding,
    # the bf16 exp on v6e/v7x, the approximate EUP reciprocal (+Newton step), and
    # the online-softmax accumulation order vs the f32 plain-softmax reference.
    np.testing.assert_allclose(np.asarray(out, dtype=np.float32),
                               np.asarray(ref, dtype=np.float32),
                               rtol=3e-2, atol=3e-2)

    print("KERNEL_OK")
</pallas_src>

<mosaic_0001>
module attributes {stable_mosaic.version = 11 : i64} {
  func.func @qkv_proj_kernel(%arg0: i32, %arg1: i32, %arg2: memref<1x8x32xbf16, #tpu.memory_space<vmem>>, %arg3: memref<1x8x32xbf16, #tpu.memory_space<vmem>>, %arg4: memref<1x8x32xbf16, #tpu.memory_space<vmem>>, %arg5: memref<32x32xbf16, #tpu.memory_space<vmem>>, %arg6: memref<1x32xbf16, #tpu.memory_space<vmem>>, %arg7: memref<32x32xbf16, #tpu.memory_space<vmem>>, %arg8: memref<1x32xbf16, #tpu.memory_space<vmem>>, %arg9: memref<32x32xbf16, #tpu.memory_space<vmem>>, %arg10: memref<1x32xbf16, #tpu.memory_space<vmem>>, %arg11: memref<1x8x32xbf16, #tpu.memory_space<vmem>>, %arg12: memref<1x8x32xbf16, #tpu.memory_space<vmem>>, %arg13: memref<1x8x32xbf16, #tpu.memory_space<vmem>>) attributes {dimension_semantics = [#tpu.dimension_semantics<parallel>, #tpu.dimension_semantics<parallel>], iteration_bounds = array<i64: 2, 1>, scalar_prefetch = 0 : i64, scratch_operands = 0 : i64, tpu.core_type = #tpu.core_type<tc>, window_params = [{transform_indices = @transform_0, window_bounds = array<i64: 1, 8, 32>}, {transform_indices = @transform_1, window_bounds = array<i64: 1, 8, 32>}, {transform_indices = @transform_2, window_bounds = array<i64: 1, 8, 32>}, {pipeline_mode = #tpu.pipeline_mode<synchronous>, transform_indices = @transform_3, window_bounds = array<i64: 32, 32>}, {pipeline_mode = #tpu.pipeline_mode<synchronous>, transform_indices = @transform_4, window_bounds = array<i64: 1, 32>}, {pipeline_mode = #tpu.pipeline_mode<synchronous>, transform_indices = @transform_5, window_bounds = array<i64: 32, 32>}, {pipeline_mode = #tpu.pipeline_mode<synchronous>, transform_indices = @transform_6, window_bounds = array<i64: 1, 32>}, {pipeline_mode = #tpu.pipeline_mode<synchronous>, transform_indices = @transform_7, window_bounds = array<i64: 32, 32>}, {pipeline_mode = #tpu.pipeline_mode<synchronous>, transform_indices = @transform_8, window_bounds = array<i64: 1, 32>}, {transform_indices = @transform_9, window_bounds = array<i64: 1, 8, 32>}, {transform_indices = @transform_10, window_bounds = array<i64: 1, 8, 32>}, {transform_indices = @transform_11, window_bounds = array<i64: 1, 8, 32>}]} {
    %c0 = arith.constant 0 : index
    %c0_0 = arith.constant 0 : index
    %c0_1 = arith.constant 0 : index
    %0 = vector.load %arg2[%c0, %c0_0, %c0_1] : memref<1x8x32xbf16, #tpu.memory_space<vmem>>, vector<1x8x32xbf16>
    %1 = vector.shape_cast %0 : vector<1x8x32xbf16> to vector<8x32xbf16>
    %c0_2 = arith.constant 0 : index
    %c0_3 = arith.constant 0 : index
    %2 = vector.load %arg5[%c0_2, %c0_3] : memref<32x32xbf16, #tpu.memory_space<vmem>>, vector<32x32xbf16>
    %cst = arith.constant dense<0.000000e+00> : vector<8x32xf32>
    %3 = tpu.matmul %1, %2, %cst {dimension_numbers = #tpu.dot_dimension_numbers<[1], [0], [0], [1], [0, 0, 1, 1], [], []>} : vector<8x32xbf16>, vector<32x32xbf16>, vector<8x32xf32> -> vector<8x32xf32>
    %c0_4 = arith.constant 0 : index
    %c0_5 = arith.constant 0 : index
    %4 = vector.load %arg6[%c0_4, %c0_5] : memref<1x32xbf16, #tpu.memory_space<vmem>>, vector<1x32xbf16>
    %5 = arith.extf %4 : vector<1x32xbf16> to vector<1x32xf32>
    %6 = vector.broadcast %5 : vector<1x32xf32> to vector<8x32xf32>
    %7 = arith.addf %3, %6 : vector<8x32xf32>
    %8 = arith.truncf %7 : vector<8x32xf32> to vector<8x32xbf16>
    %c0_6 = arith.constant 0 : index
    %c0_7 = arith.constant 0 : index
    %c0_8 = arith.constant 0 : index
    %9 = vector.load %arg11[%c0_6, %c0_7, %c0_8] : memref<1x8x32xbf16, #tpu.memory_space<vmem>>, vector<1x8x32xbf16>
    %10 = vector.shape_cast %9 : vector<1x8x32xbf16> to vector<8x32xbf16>
    %11 = vector.shape_cast %8 : vector<8x32xbf16> to vector<1x8x32xbf16>
    tpu.vector_store %arg11[%c0_6, %c0_7, %c0_8], %11 {strides = array<i32>} : memref<1x8x32xbf16, #tpu.memory_space<vmem>>, vector<1x8x32xbf16>,
    %c0_9 = arith.constant 0 : index
    %c0_10 = arith.constant 0 : index
    %c0_11 = arith.constant 0 : index
    %12 = vector.load %arg3[%c0_9, %c0_10, %c0_11] : memref<1x8x32xbf16, #tpu.memory_space<vmem>>, vector<1x8x32xbf16>
    %13 = vector.shape_cast %12 : vector<1x8x32xbf16> to vector<8x32xbf16>
    %c0_12 = arith.constant 0 : index
    %c0_13 = arith.constant 0 : index
    %14 = vector.load %arg7[%c0_12, %c0_13] : memref<32x32xbf16, #tpu.memory_space<vmem>>, vector<32x32xbf16>
    %cst_14 = arith.constant dense<0.000000e+00> : vector<8x32xf32>
    %15 = tpu.matmul %13, %14, %cst_14 {dimension_numbers = #tpu.dot_dimension_numbers<[1], [0], [0], [1], [0, 0, 1, 1], [], []>} : vector<8x32xbf16>, vector<32x32xbf16>, vector<8x32xf32> -> vector<8x32xf32>
    %c0_15 = arith.constant 0 : index
    %c0_16 = arith.constant 0 : index
    %16 = vector.load %arg8[%c0_15, %c0_16] : memref<1x32xbf16, #tpu.memory_space<vmem>>, vector<1x32xbf16>
    %17 = arith.extf %16 : vector<1x32xbf16> to vector<1x32xf32>
    %18 = vector.broadcast %17 : vector<1x32xf32> to vector<8x32xf32>
    %19 = arith.addf %15, %18 : vector<8x32xf32>
    %20 = arith.truncf %19 : vector<8x32xf32> to vector<8x32xbf16>
    %c0_17 = arith.constant 0 : index
    %c0_18 = arith.constant 0 : index
    %c0_19 = arith.constant 0 : index
    %21 = vector.load %arg12[%c0_17, %c0_18, %c0_19] : memref<1x8x32xbf16, #tpu.memory_space<vmem>>, vector<1x8x32xbf16>
    %22 = vector.shape_cast %21 : vector<1x8x32xbf16> to vector<8x32xbf16>
    %23 = vector.shape_cast %20 : vector<8x32xbf16> to vector<1x8x32xbf16>
    tpu.vector_store %arg12[%c0_17, %c0_18, %c0_19], %23 {strides = array<i32>} : memref<1x8x32xbf16, #tpu.memory_space<vmem>>, vector<1x8x32xbf16>,
    %c0_20 = arith.constant 0 : index
    %c0_21 = arith.constant 0 : index
    %c0_22 = arith.constant 0 : index
    %24 = vector.load %arg4[%c0_20, %c0_21, %c0_22] : memref<1x8x32xbf16, #tpu.memory_space<vmem>>, vector<1x8x32xbf16>
    %25 = vector.shape_cast %24 : vector<1x8x32xbf16> to vector<8x32xbf16>
    %c0_23 = arith.constant 0 : index
    %c0_24 = arith.constant 0 : index
    %26 = vector.load %arg9[%c0_23, %c0_24] : memref<32x32xbf16, #tpu.memory_space<vmem>>, vector<32x32xbf16>
    %cst_25 = arith.constant dense<0.000000e+00> : vector<8x32xf32>
    %27 = tpu.matmul %25, %26, %cst_25 {dimension_numbers = #tpu.dot_dimension_numbers<[1], [0], [0], [1], [0, 0, 1, 1], [], []>} : vector<8x32xbf16>, vector<32x32xbf16>, vector<8x32xf32> -> vector<8x32xf32>
    %c0_26 = arith.constant 0 : index
    %c0_27 = arith.constant 0 : index
    %28 = vector.load %arg10[%c0_26, %c0_27] : memref<1x32xbf16, #tpu.memory_space<vmem>>, vector<1x32xbf16>
    %29 = arith.extf %28 : vector<1x32xbf16> to vector<1x32xf32>
    %30 = vector.broadcast %29 : vector<1x32xf32> to vector<8x32xf32>
    %31 = arith.addf %27, %30 : vector<8x32xf32>
    %32 = arith.truncf %31 : vector<8x32xf32> to vector<8x32xbf16>
    %c0_28 = arith.constant 0 : index
    %c0_29 = arith.constant 0 : index
    %c0_30 = arith.constant 0 : index
    %33 = vector.load %arg13[%c0_28, %c0_29, %c0_30] : memref<1x8x32xbf16, #tpu.memory_space<vmem>>, vector<1x8x32xbf16>
    %34 = vector.shape_cast %33 : vector<1x8x32xbf16> to vector<8x32xbf16>
    %35 = vector.shape_cast %32 : vector<8x32xbf16> to vector<1x8x32xbf16>
    tpu.vector_store %arg13[%c0_28, %c0_29, %c0_30], %35 {strides = array<i32>} : memref<1x8x32xbf16, #tpu.memory_space<vmem>>, vector<1x8x32xbf16>,
    return
  }
  func.func @transform_0(%arg0: i32, %arg1: i32) -> (i32, i32, i32) {
    %c0_i32 = arith.constant 0 : i32
    %c0_i32_0 = arith.constant 0 : i32
    return %arg0, %arg1, %c0_i32 : i32, i32, i32
  }
  func.func @transform_1(%arg0: i32, %arg1: i32) -> (i32, i32, i32) {
    %c0_i32 = arith.constant 0 : i32
    %c0_i32_0 = arith.constant 0 : i32
    return %arg0, %arg1, %c0_i32 : i32, i32, i32
  }
  func.func @transform_2(%arg0: i32, %arg1: i32) -> (i32, i32, i32) {
    %c0_i32 = arith.constant 0 : i32
    %c0_i32_0 = arith.constant 0 : i32
    return %arg0, %arg1, %c0_i32 : i32, i32, i32
  }
  func.func @transform_3(%arg0: i32, %arg1: i32) -> (i32, i32) {
    %c0_i32 = arith.constant 0 : i32
    %c0_i32_0 = arith.constant 0 : i32
    %c0_i32_1 = arith.constant 0 : i32
    return %c0_i32, %c0_i32_0 : i32, i32
  }
  func.func @transform_4(%arg0: i32, %arg1: i32) -> (i32, i32) {
    %c0_i32 = arith.constant 0 : i32
    %c0_i32_0 = arith.constant 0 : i32
    %c0_i32_1 = arith.constant 0 : i32
    return %c0_i32, %c0_i32_0 : i32, i32
  }
  func.func @transform_5(%arg0: i32, %arg1: i32) -> (i32, i32) {
    %c0_i32 = arith.constant 0 : i32
    %c0_i32_0 = arith.constant 0 : i32
    %c0_i32_1 = arith.constant 0 : i32
    return %c0_i32, %c0_i32_0 : i32, i32
  }
  func.func @transform_6(%arg0: i32, %arg1: i32) -> (i32, i32) {
    %c0_i32 = arith.constant 0 : i32
    %c0_i32_0 = arith.constant 0 : i32
    %c0_i32_1 = arith.constant 0 : i32
    return %c0_i32, %c0_i32_0 : i32, i32
  }
  func.func @transform_7(%arg0: i32, %arg1: i32) -> (i32, i32) {
    %c0_i32 = arith.constant 0 : i32
    %c0_i32_0 = arith.constant 0 : i32
    %c0_i32_1 = arith.constant 0 : i32
    return %c0_i32, %c0_i32_0 : i32, i32
  }
  func.func @transform_8(%arg0: i32, %arg1: i32) -> (i32, i32) {
    %c0_i32 = arith.constant 0 : i32
    %c0_i32_0 = arith.constant 0 : i32
    %c0_i32_1 = arith.constant 0 : i32
    return %c0_i32, %c0_i32_0 : i32, i32
  }
  func.func @transform_9(%arg0: i32, %arg1: i32) -> (i32, i32, i32) {
    %c0_i32 = arith.constant 0 : i32
    %c0_i32_0 = arith.constant 0 : i32
    return %arg0, %arg1, %c0_i32 : i32, i32, i32
  }
  func.func @transform_10(%arg0: i32, %arg1: i32) -> (i32, i32, i32) {
    %c0_i32 = arith.constant 0 : i32
    %c0_i32_0 = arith.constant 0 : i32
    return %arg0, %arg1, %c0_i32 : i32, i32, i32
  }
  func.func @transform_11(%arg0: i32, %arg1: i32) -> (i32, i32, i32) {
    %c0_i32 = arith.constant 0 : i32
    %c0_i32_0 = arith.constant 0 : i32
    return %arg0, %arg1, %c0_i32 : i32, i32, i32
  }
}

</mosaic_0001>

<bundles_post_ra>
// kernel: tpu_custom_call.1
= control target key start
LH: loop header
LB: loop body
LE: loop exit
PB: predicated region body
PF: predicated region fallthrough
CT: control target
= control target key end

     0   :  { %s1856_s0 = inlined_call_operand.hbm [shape: bf16[2,8,32], index: 0, kind: input, shape index: {}]   ;;  %s1857_s1 = inlined_call_operand.hbm [shape: bf16[2,8,32], index: 1, kind: input, shape index: {}]   ;;  %s1858_s2 = inlined_call_operand.hbm [shape: bf16[2,8,32], index: 2, kind: input, shape index: {}]   ;;  %s1859_s3 = inlined_call_operand.hbm [shape: bf16[32,32], index: 3, kind: input, shape index: {}]   ;;  %s1860_s4 = inlined_call_operand.vmem [shape: bf16[1,32], index: 4, kind: input, shape index: {}]   ;;  %s1861_s5 = inlined_call_operand.hbm [shape: bf16[32,32], index: 5, kind: input, shape index: {}]   ;;  %s1862_s6 = inlined_call_operand.vmem [shape: bf16[1,32], index: 6, kind: input, shape index: {}]   ;;  %s1863_s7 = inlined_call_operand.hbm [shape: bf16[32,32], index: 7, kind: input, shape index: {}]   ;;  %s1864_s8 = inlined_call_operand.vmem [shape: bf16[1,32], index: 8, kind: input, shape index: {}]   ;;  %s1865_s9 = inlined_call_operand.hbm [shape: bf16[2,8,32], index: 9, kind: output, shape index: {0}]   ;;  %s1866_s10 = inlined_call_operand.hbm [shape: bf16[2,8,32], index: 10, kind: output, shape index: {1}]   ;;  %s1867_s11 = inlined_call_operand.hbm [shape: bf16[2,8,32], index: 11, kind: output, shape index: {2}]  }
   0x1   :  { %1885 = sst [smem:[#allocation30_spill]] %s1857_s1 }
   0x2   :  { %1886 = sst [smem:[#allocation31_spill]] %s1859_s3 }
   0x3   :  { %1887 = sst [smem:[#allocation32_spill]] %s1861_s5 }
   0x4   :  { %1888 = sst [smem:[#allocation33_spill]] %s1863_s7 }
   0x5   :  { %1889 = sst [smem:[#allocation34_spill]] %s1864_s8 }
   0x6   :  { %1890 = sst [smem:[#allocation35_spill]] %s1865_s9 }
   0x7   :  { %1891 = sst [smem:[#allocation36_spill]] %s1866_s10 }
   0x8   :  { %1892 = sst [smem:[#allocation37_spill]] %s1867_s11 }
   0x9   :  { %17 = vsyncpa [#allocation3], 0 }
   0xa   :  { %19 = vsyncpa [#allocation3 + $0x1], 0 }
   0xb   :  { %20 = vsyncpa [#allocation6], 0 }
   0xc   :  { %22 = vsyncpa [#allocation6 + $0x1], 0 }
   0xd   :  { %23 = vsyncpa [#allocation9], 0 }
   0xe   :  { %24 = vsyncpa [#allocation12], 0 }
   0xf   :  { %25 = vsyncpa [#allocation4], 0 }
  0x10   :  { %27 = vsyncpa [#allocation4 + $0x1], 0 }
  0x11   :  { %28 = vsyncpa [#allocation15], 0 }
  0x12   :  { %30 = vsyncpa [#allocation15 + $0x1], 0  ;;  %s1547_s17 = smov 0   ;;  %s1549_s18 = smov 0  }
  0x13   :  { %s1551_s19 = smov 0   ;;  %s1553_s20 = smov 0  }
  0x14   :  { %s1555_s21 = smov 0   ;;  %s1557_s22 = smov 0  }
  0x15 LB: > { %1893 = sst [smem:[#allocation23_spill]] %s1460_s17  ;;  %s1578_s23 = sadd.s32 4294967295, %s1480_s22   ;;  %s1480_s22 = sphi %s1557_s22, %s36_s22   ;;  %s1476_s21 = sphi %s1555_s21, %s1927_s21   ;;  %s1472_s20 = sphi %s1553_s20, %s1926_s20   ;;  %s1468_s19 = sphi %s1551_s19, %s1930_s19   ;;  %s1464_s18 = sphi %s1549_s18, %s1929_s18   ;;  %s1460_s17 = sphi %s1547_s17, %s1928_s17  }
  0x16   : > { %1894 = sst [smem:[#allocation24_spill]] %s1476_s21  ;;  %p969_p0 = scmp.ge.s32.totalorder %s1480_s22, 1 }
  0x17   : > { %1895 = sst [smem:[#allocation25_spill]] %s1480_s22  ;;  %p71_p1 = scmp.eq.s32.totalorder %s1578_s23, 0 }
  0x18   : > { %p347_p2 = scmp.lt.s32.totalorder %s1480_s22, 3  ;;  %s1896_s3 = sld [smem:[#allocation31_spill]] }
  0x19   : > { %s1482_s28 = smov [#allocation8]   ;;  %p973_p6 = scmp.ge.s32.totalorder %s1480_s22, 2 }
  0x1a   : > { %p1586_p3 = pnand %p969_p0, %p347_p2  ;;  %s360_s29 = sshll.u32 %s1482_s28, 4  ;;  %s361_s29 = int_to_ptr.vmem [resolvable:$true] %s360_s29 }
  0x1b   : > { %s1868_s12 = smov 64   ;;  %s1870_s13 = smov 4  }
  0x1c   : > { %p1055_p4 = pneg %p1586_p3  ;;  %s1873_s14 = sadd.s32 4294967294, %s1480_s22  }
  0x1d   : > { %s48_s15 = sadd.s32 1, %s1476_s21  ;;  %s57_s16 = sadd.s32 1, %s1468_s19 }
  0x1e   : > { %s358_s26 = sshll.u32 %s1896_s3, 4  ;;  %p1594_p5 = pnand %p1055_p4, %p71_p1  ;;  %s359_s26 = int_to_ptr.hbm [resolvable:$true] %s358_s26 }
  0x1f   : > { %p50_p7 = scmp.ge.s32.totalorder %s48_s15, 2  ;;  %p64_p8 = scmp.ne.s32.totalorder %s1468_s19, %s1464_s18 }
  0x20   : > { %1058 = dma.hbm_to_vmem [thread:$0]  (!%p1594_p5), %s359_s26, 256, %s361_s29, [#allocation9], %s1868_s12, %s1868_s12, %s1870_s13  }
  0x21   : > { %p65_p9 = scmp.eq.s32.totalorder %s1480_s22, 0  ;;  %p70_p10 = scmp.ne.s32.totalorder %s1464_s18, %s1460_s17 }
  0x22   : > { %s1932_s15 = smov (%p50_p7, %s48_s15), 0  ;;  %p278_p13 = scmp.eq.s32.totalorder %s1578_s23, 1 }
  0x23   : > { %1899 = sst [smem:[#allocation26_spill]] %s1932_s15  ;;  %p1614_p11 = por %p65_p9, %p64_p8 }
  0x24   : > { %p1620_p12 = por %p71_p1, %p70_p10  ;;  %s52_s26 = ssub.s32 %s1476_s21, %s1932_s15 }
  0x25   : > { %p55_p0 = scmp.eq.s32.totalorder %s52_s26, 0  ;;  %p284_p2 = scmp.eq.s32.totalorder %s1873_s14, 1 }
  0x26   : > { %p1629_p4 = por %p278_p13, %p64_p8  ;;  %p1088_p7 = scmp.lt.s32.totalorder %s1480_s22, 2 }
  0x27   : > { %s1635_s29 = scalar_select %p55_p0, %s1468_s19, %s57_s16  }
  0x28   : > { %s1902_s28 = scalar_select %p1629_p4, 1, 0 }
  0x29   : > { %1904 = sst [smem:[#allocation28_spill]] %s1635_s29  ;;  %p1637_p9 = por %p284_p2, %p70_p10 }
  0x2a   : > { %1903 = sst [smem:[#allocation27_spill]] %s1902_s28  ;;  %s1878_s13 = sand.u32 1, %s1468_s19  }
  0x2b   : > { %s1905_s12 = scalar_select %p1637_p9, 1, 0 }
  0x2c   : > { %s1644_s3 = sshll.u32 %s1878_s13, 2  ;;  %s1647_s15 = sshll.u32 %s1476_s21, 2 }
  0x2d   : > { %1906 = sst [smem:[#allocation29_spill]] %s1905_s12  ;;  %p1651_p8 = pnand %p1088_p7, %p1614_p11 }
  0x2e   : > { %s431_s16 = sand.u32 1, %s1480_s22   ;;  %s1908_s1 = sld [smem:[#allocation30_spill]] }
  0x2f   : > { %s435_s28 = scalar_lea.vmem [#allocation5], %s1644_s3  ;;  %s1661_s24 = scalar_lea.sflag [#allocation6], %s431_s16 }
  0x30   : > { %s444_s13 = sshll.u32 %s435_s28, 4  ;;  %s1909_s5 = sld [smem:[#allocation32_spill]]  ;;  %s445_s13 = int_to_ptr.vmem [resolvable:$true] %s444_s13 }
  0x31   : > { %s1485_s14 = smov [#allocation10]   ;;  %s1910_s7 = sld [smem:[#allocation33_spill]] }
  0x32   : > { %s1911_s16 = smov 4   ;;  %s1912_s9 = smov 64  }
  0x33   : > { %s1486_s11 = smov [#allocation11]   ;;  %s415_s28 = scalar_lea.vmem [#allocation2], %s1644_s3 }
  0x34   : > { %s440_s12 = scalar_lea.hbm %s1908_s1, %s1647_s15  ;;  %s424_s29 = sshll.u32 %s415_s28, 4  ;;  %s425_s29 = int_to_ptr.vmem [resolvable:$true] %s424_s29 }
  0x35   : > { %s442_s17 = sshll.u32 %s440_s12, 4  ;;  %s377_s12 = sshll.u32 %s1485_s14, 4  ;;  %s443_s17 = int_to_ptr.hbm [resolvable:$true] %s442_s17  ;;  %s378_s12 = int_to_ptr.vmem [resolvable:$true] %s377_s12 }
  0x36   : > { %1071 = dma.hbm_to_vmem [thread:$0]  (!%p1651_p8), %s443_s17, 64, %s445_s13, %s1661_s24  }
  0x37   : > { %s375_s22 = sshll.u32 %s1909_s5, 4  ;;  %s392_s1 = sshll.u32 %s1910_s7, 4  ;;  %s376_s22 = int_to_ptr.hbm [resolvable:$true] %s375_s22  ;;  %s393_s1 = int_to_ptr.hbm [resolvable:$true] %s392_s1 }
  0x38   : > { %1061 = dma.hbm_to_vmem [thread:$0]  (!%p1594_p5), %s376_s22, 256, %s378_s12, [#allocation9], %s1912_s9, %s1912_s9, %s1911_s16  }
  0x39   : > { %s394_s17 = sshll.u32 %s1486_s11, 4  ;;  %s420_s14 = scalar_lea.hbm %s1856_s0, %s1647_s15  ;;  %s395_s17 = int_to_ptr.vmem [resolvable:$true] %s394_s17 }
  0x3a   : > { %1064 = dma.hbm_to_vmem [thread:$0]  (!%p1594_p5), %s393_s1, 256, %s395_s17, [#allocation12], %s1912_s9, %s1912_s9, %s1911_s16  }
  0x3b   : > { %s422_s5 = sshll.u32 %s420_s14, 4  ;;  %s1913_s22 = sand.u32 1, %s1468_s19   ;;  %s423_s5 = int_to_ptr.hbm [resolvable:$true] %s422_s5 }
  0x3c   : > { %s412_s12 = scalar_lea.sflag [#allocation3], %s1913_s22  ;;  %s460_s7 = scalar_lea.hbm %s1858_s2, %s1647_s15 }
  0x3d   : > { %1068 = dma.hbm_to_vmem [thread:$0]  (!%p1651_p8), %s423_s5, 64, %s425_s29, %s412_s12  }
  0x3e   : > { %s455_s10 = scalar_lea.vmem [#allocation7], %s1644_s3  ;;  %s462_s1 = sshll.u32 %s460_s7, 4  ;;  %s463_s1 = int_to_ptr.hbm [resolvable:$true] %s462_s1 }
  0x3f   : > { %s464_s8 = sshll.u32 %s455_s10, 4  ;;  %473 = sbr.rel (%p1586_p3) target bundleno = 247 (0xf7), region = 56  ;;  %s465_s8 = int_to_ptr.vmem [resolvable:$true] %s464_s8 }
  0x40   : > { %1074 = dma.hbm_to_vmem [thread:$0]  (!%p1651_p8), %s463_s1, 64, %s465_s8, %s1661_s24  }
  0x41   : > { %s1702_s9 = sand.u32 (!%p1586_p3), 1, %s1464_s18  }
  0x42   : > { %s1705_s5 = sshll.u32 (!%p1586_p3), %s1702_s9, 2  ;;  %s476_s15 = scalar_lea.sflag (!%p1586_p3), [#allocation3], %s1702_s9 }
  0x43   : > { %s479_s3 = scalar_lea.vmem (!%p1586_p3), [#allocation2], %s1705_s5 }
  0x44   : > { %1435 = dma.done.wait (%p1620_p12), %s476_s15, 64  }
  0x45   : > { %1437 = vsyncadd (%p1620_p12), %s476_s15, 4294967232  ;;  %s485_s7 = sand.u32 1, %s1578_s23   ;;  %s489_s10 = scalar_lea.vmem [#allocation5], %s1705_s5 }
  0x46   : > { %s486_s8 = scalar_lea.sflag [#allocation6], %s485_s7 }
  0x47   : > { %1439 = dma.done.wait (%p1620_p12), %s486_s8, 128  }
  0x48   : > { %1441 = vsyncadd (%p1620_p12), %s486_s8, 4294967168  ;;  %s499_s27 = scalar_lea.vmem [#allocation7], %s1705_s5 }
  0x49   : > { %1443 = dma.done.wait (%p71_p1), [#allocation9], 512  }
  0x4a   : > { %1445 = vsyncadd (%p71_p1), [#allocation9], 4294966784 }
  0x4b   : > { %1447 = dma.done.wait (%p71_p1), [#allocation12], 256  }
  0x4c   : > { %1449 = vsyncadd (%p71_p1), [#allocation12], 4294967040  ;;  %v1026_v0 = vld [vmem:[#allocation8 + $0x8] sm:$0xff]  ;;  %v1028_v1 = vld [vmem:[#allocation10 + $0x8] sm:$0xff]  ;;  %vm595_vm0 = vcmask 261120   ;;  %s1737_s17 = sshll.u32 %s1472_s20, 2 }
  0x4d   : > { %v1030_v2 = vld [vmem:[#allocation11 + $0x8] sm:$0xff]  ;;  %605 = vmatpush.bf16.msra.mxu0 %v1026_v0  ;;  %644 = vmatpush.bf16.msra.mxu1 %v1028_v1  ;;  %v1025_v3 = vld [vmem:[#allocation8] sm:$0xff]  ;;  %v1027_v4 = vld [vmem:[#allocation10] sm:$0xff]  ;;  %s1914_s14 = sld [smem:[#allocation34_spill]]  ;;  %s566_s11 = scalar_lea.vmem [#allocation14], %s1705_s5  ;;  %vm613_vm1 = vcmask 257024  }
  0x4e   : > { %682 = vmatpush.bf16.msra.mxu2 %v1030_v2  ;;  %v1029_v5 = vld [vmem:[#allocation11] sm:$0xff]  ;;  %v575_v6 = vld [vmem:[%s479_s3] sm:$0xf]  ;;  %v615_v7 = vld [vmem:[%s489_s10] sm:$0xf]  ;;  %s1915_s22 = sld [smem:[#allocation36_spill]] }
  0x4f   : > { %v653_v8 = vld [vmem:[%s499_s27] sm:$0xf]  ;;  %v580_v9 = vld [vmem:[%s1860_s4] sm:$0x1]  ;;  %s1747_s1 = sshll.u32 %s566_s11, 4  ;;  %s1917_s3 = sld [smem:[#allocation35_spill]]  ;;  %s731_s1 = int_to_ptr.vmem [resolvable:$true] %s1747_s1 }
  0x50   : > { %v620_v10 = vld [vmem:[%s1862_s6] sm:$0x1]  ;;  %v581_v11 = vunpack.c.l.bf16 %v580_v9  ;;  %s559_s27 = scalar_lea.vmem [#allocation13], %s1705_s5  ;;  %s1918_s21 = sld [smem:[#allocation37_spill]] }
  0x51   : > { %606 = vmatpush.bf16.msra.mxu0 %v1025_v3  ;;  %645 = vmatpush.bf16.msra.mxu1 %v1027_v4  ;;  %v621_v12 = vunpack.c.l.bf16 %v620_v10  ;;  %s1759_s25 = sshll.u32 %s559_s27, 4  ;;  %s573_s29 = scalar_lea.vmem [#allocation16], %s1705_s5  ;;  %s716_s25 = int_to_ptr.vmem [resolvable:$true] %s1759_s25 }
  0x52   : > { %683 = vmatpush.bf16.msra.mxu2 %v1029_v5  ;;  %v582_v13 = vperm.slane %v581_v11, 0  ;;  %s1780_s15 = scalar_lea.sflag [#allocation15], %s485_s7 }
  0x53   : > { %v622_v14 = vperm.slane %v621_v12, 0  ;;  %v658_v15 = vld [vmem:[%s1914_s14] sm:$0x1] }
  0x54   : > { %998 = vmatmul.msk.bf16.vlgmr.msra.gmra.mxu0 %vm595_vm0, %v575_v6  ;;  %1007 = vmatmul.msk.bf16.vlgmr.msra.gmra.mxu1 %vm595_vm0, %v615_v7  ;;  %s1916_s12 = smov %s1915_s22  ;;  %s728_s30 = scalar_lea.hbm %s1915_s22, %s1737_s17  ;;  %v659_v18 = vunpack.c.l.bf16 %v658_v15 }
  0x55   : > { %1016 = vmatmul.msk.bf16.vlgmr.msra.gmra.mxu2 %vm595_vm0, %v653_v8  ;;  %s713_s8 = scalar_lea.hbm %s1917_s3, %s1737_s17  ;;  %s1754_s10 = sshll.u32 %s728_s30, 4  ;;  %s733_s10 = int_to_ptr.hbm [resolvable:$true] %s1754_s10 }
  0x56   : > { %s1761_s26 = sshll.u32 %s713_s8, 4  ;;  %s1919_s13 = smov %s1918_s21  ;;  %v660_v23 = vperm.slane %v659_v18, 0  ;;  %s718_s26 = int_to_ptr.hbm [resolvable:$true] %s1761_s26 }
  0x57   : > { %s743_s14 = scalar_lea.hbm %s1918_s21, %s1737_s17  ;;  %s1774_s22 = sshll.u32 %s573_s29, 4  ;;  %s746_s22 = int_to_ptr.vmem [resolvable:$true] %s1774_s22 }
  0x58   : > { %s1776_s30 = sshll.u32 %s743_s14, 4  ;;  %s1340_s20 = sshra.s32 %s733_s10, 4  ;;  %s1341_s20 = int_to_ptr.hbm [resolvable:$true] %s1340_s20  ;;  %s748_s30 = int_to_ptr.hbm [resolvable:$true] %s1776_s30 }
  0x59   : > { %s1342_s17 = scalar_lea.hbm %s1341_s20, 4  ;;  %p1347_p10 = scmp.lt.s32.totalorder %s1341_s20, %s1916_s12 }
  0x5a   : > { %p1343_p1 = scmp.ne.s32.totalorder %s1341_s20, %s1342_s17 }
  0x5c   : > { %p1344_p3 = pnand %p1343_p1, %p1629_p4 }
  0x5e   : > { %p1345_p5 = pneg %p1344_p3 }
  0xd1   : > { %v608_v16 = vpop.f32.mrf.mxu0  ;;  %v647_v17 = vpop.f32.mrf.mxu1 }
  0xd2   : > { %v609_v19 = vadd.f32 %v608_v16, %v582_v13  ;;  %v648_v20 = vadd.f32 %v647_v17, %v622_v14 }
  0xd4   : > { %v612_v21 = vpack.c.bf16 %v609_v19, %v609_v19  ;;  %v651_v22 = vpack.c.bf16 %v648_v20, %v648_v20 }
  0xd6   : > { %652 = vst.msk [vmem:[%s566_s11] sm:$0xf] %vm613_vm1, %v651_v22  ;;  %s1346_s11 = scalar_lea.hbm %s1916_s12, 8 }
  0xd7   : > { %p1348_p11 = scmp.lt.s32.totalorder %s1346_s11, %s1342_s17 }
  0xd9   : > { %p1349_p12 = por %p1348_p11, %p1347_p10 }
  0xdb   : > { %p1350_p13 = pnand %p1349_p12, %p1345_p5 }
  0xdd   : > { %1353 = shalt.err (!%p1350_p13)
}
  0xde   : > { %1050 = dma.vmem_to_hbm [thread:$0]  (%p1629_p4), %s731_s1, 64, %s733_s10, %s1780_s15   ;;  %614 = vst.msk [vmem:[%s559_s27] sm:$0xf] %vm613_vm1, %v612_v21  ;;  %v685_v24 = vpop.f32.mrf.mxu2 }
  0xdf   : > { %s692_s23 = scalar_lea.sflag [#allocation4], %s1702_s9  ;;  %s1368_s7 = sshra.s32 %s718_s26, 4  ;;  %s1369_s7 = int_to_ptr.hbm [resolvable:$true] %s1368_s7 }
  0xe0   : > { %s1370_s14 = scalar_lea.hbm %s1369_s7, 4  ;;  %s1374_s8 = scalar_lea.hbm %s1917_s3, 8 }
  0xe1   : > { %p1371_p0 = scmp.ne.s32.totalorder %s1369_s7, %s1370_s14  ;;  %p1375_p8 = scmp.lt.s32.totalorder %s1369_s7, %s1917_s3 }
  0xe2   : > { %p1376_p1 = scmp.lt.s32.totalorder %s1374_s8, %s1370_s14 }
  0xe3   : > { %p1372_p2 = pnand %p1371_p0, %p1629_p4 }
  0xe4   : > { %p1377_p3 = por %p1376_p1, %p1375_p8 }
  0xe5   : > { %p1373_p7 = pneg %p1372_p2 }
  0xe7   : > { %p1378_p5 = pnand %p1377_p3, %p1373_p7 }
  0xe9   : > { %1381 = shalt.err (!%p1378_p5)
}
  0xea   : > { %1049 = dma.vmem_to_hbm [thread:$0]  (%p1629_p4), %s716_s25, 64, %s718_s26, %s692_s23   ;;  %v686_v25 = vadd.f32 %v685_v24, %v660_v23  ;;  %v610_v26 = vpop.f32.mrf.mxu0  ;;  %v649_v27 = vpop.f32.mrf.mxu1 }
  0xeb   : > { %s1396_s9 = sshra.s32 %s748_s30, 4  ;;  %s1402_s25 = scalar_lea.hbm %s1919_s13, 8  ;;  %s1397_s9 = int_to_ptr.hbm [resolvable:$true] %s1396_s9 }
  0xec   : > { %v689_v28 = vpack.c.bf16 %v686_v25, %v686_v25  ;;  %s1398_s1 = scalar_lea.hbm %s1397_s9, 4  ;;  %p1403_p13 = scmp.lt.s32.totalorder %s1397_s9, %s1919_s13 }
  0xed   : > { %p1399_p10 = scmp.ne.s32.totalorder %s1397_s9, %s1398_s1  ;;  %p1404_p0 = scmp.lt.s32.totalorder %s1402_s25, %s1398_s1 }
  0xee   : > { %690 = vst.msk [vmem:[%s573_s29] sm:$0xf] %vm613_vm1, %v689_v28 }
  0xef   : > { %p1400_p11 = pnand %p1399_p10, %p1629_p4  ;;  %p1405_p2 = por %p1404_p0, %p1403_p13 }
  0xf1   : > { %p1401_p12 = pneg %p1400_p11 }
  0xf3   : > { %p1406_p7 = pnand %p1405_p2, %p1401_p12 }
  0xf5   : > { %1409 = shalt.err (!%p1406_p7)
}
  0xf6   : > { %1051 = dma.vmem_to_hbm [thread:$0]  (%p1629_p4), %s746_s22, 64, %s748_s30, %s1780_s15   ;;  %v687_v29 = vpop.f32.mrf.mxu2 }
  0xf7 PF: > { %s1921_s5 = sld [smem:[#allocation23_spill]]  ;;  %p1076_p8 = pnand %p973_p6, %p1637_p9 }
  0xf8   : > { %s1923_s21 = sld [smem:[#allocation25_spill]] }
  0xf9   : > { %p1077_p1 = pneg %p1076_p8 }
  0xfd   : > { %s759_s23 = sand.u32 1, %s1921_s5  }
  0xfe   : > { %s760_s7 = scalar_lea.sflag [#allocation4], %s759_s23 }
  0xff   : > { %1451 = dma.done.wait (%p1077_p1), %s760_s7, 64  }
 0x100   : > { %1453 = vsyncadd (%p1077_p1), %s760_s7, 4294967232  ;;  %s1924_s14 = sadd.s32 4294967294, %s1923_s21  }
 0x101   : > { %s769_s20 = sand.u32 1, %s1924_s14  }
 0x102   : > { %s770_s17 = scalar_lea.sflag [#allocation15], %s769_s20 }
 0x103   : > { %1455 = dma.done.wait (%p1077_p1), %s770_s17, 128  }
 0x104   : > { %1457 = vsyncadd (%p1077_p1), %s770_s17, 4294967168  ;;  %s36_s22 = sadd.s32 1, %s1923_s21   ;;  %s1925_s28 = sld [smem:[#allocation28_spill]] }
 0x105   : > { %p33_p4 = scmp.ge.s32.totalorder %s36_s22, 4   ;;  %s1926_s20 = sld [smem:[#allocation24_spill]] }
 0x106   : > { %s1927_s21 = sld [smem:[#allocation26_spill]]  ;;  %s1928_s17 = smov %s1464_s18 }
 0x107   : > { %s1929_s18 = smov %s1468_s19  ;;  %35 = sbr.rel (!%p33_p4) target bundleno = 21 (0x15), region = 169 }
 0x10a   : > { %s1930_s19 = smov %s1925_s28 }
 0x10c   :  { %786 = vsyncpa [#allocation3], 1 }
 0x10d   :  { %788 = vsyncpa [#allocation3 + $0x1], 1 }
 0x10e   :  { %789 = vsyncpa [#allocation6], 1 }
 0x10f   :  { %791 = vsyncpa [#allocation6 + $0x1], 1 }
 0x110   :  { %792 = vsyncpa [#allocation9], 1 }
 0x111   :  { %793 = vsyncpa [#allocation12], 1 }
 0x112   :  { %794 = vsyncpa [#allocation4], 1 }
 0x113   :  { %796 = vsyncpa [#allocation4 + $0x1], 1 }
 0x114   :  { %797 = vsyncpa [#allocation15], 1 }
 0x115   :  { %799 = vsyncpa [#allocation15 + $0x1], 1 }

</bundles_post_ra>
